<compile_context>
chip_gen: v7x
topology: tpu7x:2x2x1
jax: 0.10.0
libtpu: 0.0.40
codegen_flags: <defaults>
</compile_context>

<pallas_src>
import functools

import jax
import jax.numpy as jnp
from jax import lax
from jax.experimental import pallas as pl
from jax.experimental.pallas import tpu as pltpu

_LANE = 128      # lane width: keep embedding dim a multiple of 128
_SUBLANE = 8     # sublane width: keep token blocks a multiple of 8
_MAX_TB = 256    # tokens gathered per grid step


def _round_up(x, m):
    return (x + m - 1) // m * m


def _token_embedding_kernel(tok_ref, w_hbm, o_ref, rows, sem, *, tb):
    """One grid step == one block of `tb` tokens.

    tok_ref : (Tp,)    int32  SMEM scalar prefetch -- token ids
    w_hbm   : (V, Dp)  f32    HBM (pl.ANY)         -- table with bias folded in
    o_ref   : (tb, Dp) f32    VMEM output block
    rows    : (tb, Dp) f32    VMEM staging buffer for gathered rows
    sem     :                 DMA semaphore shared by all row copies
    """
    base = pl.program_id(0) * tb

    # Issue all `tb` row gathers up front so the small (Dp*4 byte) DMAs
    # overlap: the gather is DMA-latency bound, not bandwidth bound.
    def issue(j, carry):
        tid = tok_ref[base + j]
        pltpu.make_async_copy(w_hbm.at[tid], rows.at[j], sem).start()
        return carry

    lax.fori_loop(0, tb, issue, 0)

    # Drain: every copy is the same size, so waiting `tb` times on an
    # identically-shaped descriptor consumes exactly the signalled amount.
    def drain(j, carry):
        pltpu.make_async_copy(w_hbm.at[0], rows.at[0], sem).wait()
        return carry

    lax.fori_loop(0, tb, drain, 0)

    # Single vectorized, lane/sublane-dense store (bias already folded in).
    o_ref[...] = rows[...]


def token_embedding(tokens, weight_t, bias):
    """Pallas equivalent of TokenEmbedding.forward.

    tokens   : (B, S) integer array
    weight_t : (V, D) float32  -- Linear weight stored PRE-TRANSPOSED (W^T)
    bias     : (D,)   float32
    returns  : (B, S, D) float32
    """
    B, S = tokens.shape
    V, D = weight_t.shape
    T = B * S

    # Lane-dense embedding dim.  (Store the table pre-padded in production so
    # this pad -- and the final column slice -- are no-ops.)
    Dp = _round_up(D, _LANE)

    # Pre-fold the bias into the table: the kernel becomes a pure gather.
    table = (jnp.asarray(weight_t, jnp.float32)
             + jnp.asarray(bias, jnp.float32)[None, :])
    if Dp != D:
        table = jnp.pad(table, ((0, 0), (0, Dp - D)))

    # Token-block size: multiple of 8 (sublane-dense output blocks), capped so
    # staging + double-buffered output stay small even at large Dp.
    TB = min(_MAX_TB, _round_up(T, _SUBLANE))
    Tp = _round_up(T, TB)

    # Clamp ids so a bad token can never drive an out-of-bounds row DMA.
    # TODO(synk): torch's F.one_hot raises on out-of-range ids; the clamp
    # silently maps them to valid rows instead of erroring.
    tok_flat = jnp.clip(tokens.reshape(T).astype(jnp.int32), 0, V - 1)
    if Tp != T:
        tok_flat = jnp.pad(tok_flat, (0, Tp - T))

    kernel = functools.partial(_token_embedding_kernel, tb=TB)

    out = pl.pallas_call(
        kernel,
        out_shape=jax.ShapeDtypeStruct((Tp, Dp), jnp.float32),
        grid_spec=pltpu.PrefetchScalarGridSpec(
            num_scalar_prefetch=1,
            grid=(Tp // TB,),
            in_specs=[
                # Table stays in HBM; the kernel gathers rows with manual DMAs.
                pl.BlockSpec(memory_space=pl.ANY),
            ],
            out_specs=pl.BlockSpec((TB, Dp), lambda i, tok: (i, 0)),
            scratch_shapes=[
                pltpu.VMEM((TB, Dp), jnp.float32),
                pltpu.SemaphoreType.DMA,
            ],
        ),
        # Token blocks are fully independent -> shard across both TCs on v7x.
        compiler_params=pltpu.CompilerParams(
            dimension_semantics=("parallel",)),
        # Pure memory traffic: gathered row reads + dense output writes.
        cost_estimate=pl.CostEstimate(
            flops=Tp * Dp, transcendentals=0,
            bytes_accessed=2 * Tp * Dp * 4),
    )(tok_flat, table)

    if Tp != T or Dp != D:
        # No-op in the common pre-padded / lane-aligned case (as in the demo).
        out = out[:T, :D]
    return out.reshape(B, S, D)


def init_token_embedding_params(key, vocab_size, num_dim):
    """Deterministic init matching the torch module's parameter shapes.

    Linear(vocab_size, num_dim): weight (num_dim, vocab_size), bias (num_dim,)
    kaiming_uniform_(nonlinearity='relu'): U(-sqrt(6/fan_in), sqrt(6/fan_in))
    bias: default Linear init U(-1/sqrt(fan_in), 1/sqrt(fan_in))
    """
    if vocab_size < 1:
        raise ValueError('There must be at least one token.')
    if num_dim >= vocab_size:
        raise ValueError('The embedding dimension cannot be larger than the '
                         'vocabulary size.')
    kw, kb = jax.random.split(key)
    fan_in = vocab_size
    w_bound = (6.0 / fan_in) ** 0.5
    b_bound = 1.0 / (fan_in ** 0.5)
    weight = jax.random.uniform(kw, (num_dim, vocab_size), jnp.float32,
                                minval=-w_bound, maxval=w_bound)
    bias = jax.random.uniform(kb, (num_dim,), jnp.float32,
                              minval=-b_bound, maxval=b_bound)
    return weight, bias


if __name__ == "__main__":
    vocab_size = 512
    num_dim = 128          # lane-dense embedding dim (multiple of 128)
    B, S = 2, 8

    key = jax.random.PRNGKey(0)
    kparam, ktok = jax.random.split(key)
    weight, bias = init_token_embedding_params(kparam, vocab_size, num_dim)
    tokens = jax.random.randint(ktok, (B, S), 0, vocab_size, dtype=jnp.int32)

    # Store the weight pre-transposed (V, D) once; no per-call transpose.
    weight_t = jnp.asarray(weight).T

    out = token_embedding(tokens, weight_t, bias)
    out = jax.block_until_ready(out)

    # Pure-JAX reference (one-hot -> Linear), same semantics as the torch module.
    one_hot = jax.nn.one_hot(tokens, vocab_size, dtype=jnp.float32)   # (B, S, V)
    ref = jnp.einsum("bsv,dv->bsd", one_hot, weight) + bias           # (B, S, D)

    assert out.shape == (B, S, num_dim)
    assert out.dtype == jnp.float32
    assert jnp.allclose(out, ref, atol=1e-5, rtol=1e-5)

    print("KERNEL_OK")
</pallas_src>

<mosaic_0001>
module attributes {stable_mosaic.version = 11 : i64} {
  func.func @_token_embedding_kernel(%arg0: i32, %arg1: memref<16xi32, #tpu.memory_space<smem>>, %arg2: memref<512x128xf32, #tpu.memory_space<any>>, %arg3: memref<16x128xf32, #tpu.memory_space<vmem>>, %arg4: memref<16x128xf32, #tpu.memory_space<vmem>>, %arg5: memref<!tpu.dma_semaphore, #tpu.memory_space<semaphore_mem>>) attributes {dimension_semantics = [#tpu.dimension_semantics<parallel>], iteration_bounds = array<i64: 1>, scalar_prefetch = 1 : i64, scratch_operands = 2 : i64, tpu.core_type = #tpu.core_type<tc>, window_params = [{}, {transform_indices = @transform_1, window_bounds = array<i64: 16, 128>}]} {
    %c16_i32 = arith.constant 16 : i32
    %0 = arith.muli %arg0, %c16_i32 : i32
    %c0_i32 = arith.constant 0 : i32
    %c16_i32_0 = arith.constant 16 : i32
    %1 = arith.addi %c0_i32, %c16_i32_0 : i32
    %c1_i32 = arith.constant 1 : i32
    scf.for %arg6 = %c0_i32 to %1 step %c1_i32  : i32 {
      %5 = arith.addi %0, %arg6 : i32
      %6 = arith.index_cast %5 : i32 to index
      %7 = memref.load %arg1[%6] : memref<16xi32, #tpu.memory_space<smem>>
      %c0_i32_8 = arith.constant 0 : i32
      %8 = tpu.memref_slice %arg2[%7, %c0_i32_8] : memref<512x128xf32, #tpu.memory_space<any>> -> memref<1x128xf32, #tpu.memory_space<any>>
      %9 = tpu.memref_squeeze %8 : memref<1x128xf32, #tpu.memory_space<any>> -> memref<128xf32, #tpu.memory_space<any>>
      %c0_i32_9 = arith.constant 0 : i32
      %10 = tpu.memref_slice %arg4[%arg6, %c0_i32_9] : memref<16x128xf32, #tpu.memory_space<vmem>> -> memref<1x128xf32, #tpu.memory_space<vmem>>
      %11 = tpu.memref_squeeze %10 : memref<1x128xf32, #tpu.memory_space<vmem>> -> memref<128xf32, #tpu.memory_space<vmem>>
      tpu.enqueue_dma source(%9 : memref<128xf32, #tpu.memory_space<any>>) target(%11 : memref<128xf32, #tpu.memory_space<vmem>>) target_semaphore(%arg5 : memref<!tpu.dma_semaphore, #tpu.memory_space<semaphore_mem>>)
    }
    %c16_i32_1 = arith.constant 16 : i32
    %c0_i32_2 = arith.constant 0 : i32
    %c16_i32_3 = arith.constant 16 : i32
    %2 = arith.addi %c0_i32_2, %c16_i32_3 : i32
    %c1_i32_4 = arith.constant 1 : i32
    scf.for %arg6 = %c0_i32_2 to %2 step %c1_i32_4  : i32 {
      %c0_i32_8 = arith.constant 0 : i32
      %c0_i32_9 = arith.constant 0 : i32
      %c0_i32_10 = arith.constant 0 : i32
      %5 = tpu.memref_slice %arg2[%c0_i32_8, %c0_i32_10] : memref<512x128xf32, #tpu.memory_space<any>> -> memref<1x128xf32, #tpu.memory_space<any>>
      %6 = tpu.memref_squeeze %5 : memref<1x128xf32, #tpu.memory_space<any>> -> memref<128xf32, #tpu.memory_space<any>>
      %c0_i32_11 = arith.constant 0 : i32
      %7 = tpu.memref_slice %arg4[%c0_i32_9, %c0_i32_11] : memref<16x128xf32, #tpu.memory_space<vmem>> -> memref<1x128xf32, #tpu.memory_space<vmem>>
      %8 = tpu.memref_squeeze %7 : memref<1x128xf32, #tpu.memory_space<vmem>> -> memref<128xf32, #tpu.memory_space<vmem>>
      tpu.wait_dma2 semaphore(%arg5 : memref<!tpu.dma_semaphore, #tpu.memory_space<semaphore_mem>>) src(%6 : memref<128xf32, #tpu.memory_space<any>>) dst(%8 : memref<128xf32, #tpu.memory_space<vmem>>)
    }
    %c0 = arith.constant 0 : index
    %c0_5 = arith.constant 0 : index
    %3 = vector.load %arg4[%c0, %c0_5] : memref<16x128xf32, #tpu.memory_space<vmem>>, vector<16x128xf32>
    %c0_6 = arith.constant 0 : index
    %c0_7 = arith.constant 0 : index
    %4 = vector.load %arg3[%c0_6, %c0_7] : memref<16x128xf32, #tpu.memory_space<vmem>>, vector<16x128xf32>
    tpu.vector_store %arg3[%c0_6, %c0_7], %3 {strides = array<i32>} : memref<16x128xf32, #tpu.memory_space<vmem>>, vector<16x128xf32>,
    return
  }
  func.func @transform_1(%arg0: i32, %arg1: memref<16xi32, #tpu.memory_space<smem>>) -> (i32, i32) {
    %c0_i32 = arith.constant 0 : i32
    %c0_i32_0 = arith.constant 0 : i32
    return %arg0, %c0_i32 : i32, i32
  }
}

</mosaic_0001>

<bundles_post_ra>
// kernel: tpu_custom_call.1
= control target key start
LH: loop header
LB: loop body
LE: loop exit
PB: predicated region body
PF: predicated region fallthrough
CT: control target
= control target key end

     0   :  { %s245_s0 = inlined_call_operand.hbm [shape: s32[16], index: 0, kind: input, shape index: {}]   ;;  %s246_s1 = inlined_call_operand.hbm [shape: f32[512,128], index: 1, kind: input, shape index: {}]   ;;  %s247_s2 = inlined_call_operand.hbm [shape: f32[16,128], index: 2, kind: output, shape index: {}]  }
   0x1   :  { %s104_s11 = scalar_lea.hbm %s245_s0, 16 }
   0x2   :  { %p105_p0 = scmp.ne.s32.totalorder %s245_s0, %s104_s11  ;;  %p108_p1 = scmp.lt.u32.totalorder %s104_s11, %s245_s0 }
   0x4   :  { %p110_p2 = pnand %p108_p1, %p105_p0 }
   0x6   :  { %113 = shalt.err (!%p110_p2)  }
   0x7   :  { %s182_s16 = smov [#allocation5]  }
   0x8   :  { %8 = dma.hbm_to_smem %s245_s0, 16, %s182_s16, [#allocation4] }
   0x9   :  { %168 = dma.done.wait [#allocation4], 16 }
   0xa   :  { %169 = vsyncadd [#allocation4], 4294967280 }
   0xb   :  { %10 = sfence }
   0xc   :  { %11 = vsyncpa [#allocation7], 0  ;;  %s214_s19 = smov 0  }
   0xd LB: > { %s20_s20 = sld [smem:[#allocation5 + %s176_s19]]  ;;  %s23_s21 = scalar_lea.vmem [#allocation2], %s176_s19  ;;  %s176_s19 = sphi %s214_s19, %s18_s19  }
   0xe   : > { %s31_s22 = sshll.u32 %s23_s21, 4  ;;  %s116_s29 = scalar_lea.hbm %s246_s1, 8192  ;;  %s32_s22 = int_to_ptr.vmem [resolvable:$true] %s31_s22 }
  0x13   : > { %s82_s23 = sshll.u32 %s20_s20, 4 }
  0x14   : > { %s22_s25 = scalar_lea.hbm %s246_s1, %s82_s23 }
  0x15   : > { %s114_s26 = scalar_lea.hbm %s22_s25, 16  ;;  %p117_p4 = scmp.lt.u32.totalorder %s22_s25, %s246_s1 }
  0x16   : > { %p115_p3 = scmp.ne.s32.totalorder %s22_s25, %s114_s26  ;;  %p118_p5 = scmp.lt.u32.totalorder %s116_s29, %s114_s26 }
  0x17   : > { %p120_p7 = scmp.lt.u32.totalorder %s114_s26, %s22_s25 }
  0x18   : > { %p119_p6 = por %p118_p5, %p117_p4 }
  0x1a   : > { %p121_p8 = por %p120_p7, %p119_p6 }
  0x1c   : > { %p122_p9 = pnand %p121_p8, %p115_p3 }
  0x1e   : > { %125 = shalt.err (!%p122_p9)  }
  0x1f   : > { %s126_s4 = scalar_lea.vmem %s32_s22, 16  ;;  %s183_s5 = smov [#allocation2]  }
  0x20   : > { %p127_p10 = scmp.ne.s32.totalorder %s32_s22, %s126_s4  ;;  %s128_s6 = sshll.u32 %s183_s5, 4  ;;  %s129_s6 = int_to_ptr.vmem [resolvable:$false] %s128_s6 }
  0x21   : > { %s130_s7 = scalar_lea.vmem %s129_s6, 256  ;;  %p131_p11 = scmp.lt.s32.totalorder %s32_s22, %s129_s6 }
  0x22   : > { %p132_p12 = scmp.lt.s32.totalorder %s130_s7, %s126_s4 }
  0x24   : > { %p133_p13 = por %p132_p12, %p131_p11 }
  0x26   : > { %p134_p0 = pnand %p133_p13, %p127_p10 }
  0x28   : > { %137 = shalt.err (!%p134_p0)  }
  0x29   : > { %34 = dma.hbm_to_vmem [thread:$0]  %s22_s25, 16, %s32_s22, [#allocation3] }
  0x2a   : > { %s18_s19 = sadd.s32 1, %s176_s19  }
  0x2b   : > { %p15_p1 = scmp.ge.s32.totalorder %s18_s19, 16  }
  0x2c   :  { %s178_s8 = smov (%p15_p1), 0  }
  0x2d   :  { %17 = sbr.rel (!%p15_p1) target bundleno = 13 (0xd), region = 40 }
  0x34 LB: > { %170 = dma.done.wait [#allocation3], 16  ;;  %s180_s8 = sphi %s178_s8, %s40_s8  }
  0x35   : > { %171 = vsyncadd [#allocation3], 4294967280  ;;  %s40_s8 = sadd.s32 1, %s180_s8  }
  0x36   : > { %p37_p2 = scmp.ge.s32.totalorder %s40_s8, 16  }
  0x37   :  { %v43_v0 = vld [vmem:[#allocation2] sm:$0xff] (%p37_p2)  ;;  %v44_v1 = vld [vmem:[#allocation2 + $0x8] sm:$0xff] (%p37_p2)  ;;  %s184_s9 = smov (%p37_p2), [#allocation6]  }
  0x38   :  { %39 = sbr.rel (!%p37_p2) target bundleno = 52 (0x34), region = 51  ;;  %45 = vst [vmem:[#allocation6] sm:$0xff] (%p37_p2), %v43_v0  ;;  %46 = vst [vmem:[#allocation6 + $0x8] sm:$0xff] (%p37_p2), %v44_v1  ;;  %s52_s10 = sshll.u32 (%p37_p2), %s184_s9, 4  ;;  %s53_s10 = int_to_ptr.vmem [resolvable:$true] %s52_s10 }
  0x39   :  { %s138_s11 = scalar_lea.vmem (%p37_p2), %s53_s10, 256  ;;  %p143_p4 = scmp.lt.s32.totalorder (%p37_p2), %s53_s10, %s53_s10 }
  0x3a   :  { %p139_p3 = scmp.ne.s32.totalorder (%p37_p2), %s53_s10, %s138_s11  ;;  %p144_p5 = scmp.lt.s32.totalorder (%p37_p2), %s138_s11, %s138_s11 }
  0x3c   :  { %p145_p6 = por (%p37_p2), %p144_p5, %p143_p4 }
  0x3e   :  { %p146_p7 = pnand (%p37_p2), %p145_p6, %p139_p3 }
  0x40   :  { %149 = shalt.err (!%p146_p7)
}
  0x41   :  { %s150_s13 = scalar_lea.hbm %s247_s2, 256 }
  0x42   :  { %p151_p8 = scmp.ne.s32.totalorder %s247_s2, %s150_s13  ;;  %p154_p9 = scmp.lt.u32.totalorder %s150_s13, %s247_s2 }
  0x44   :  { %p156_p10 = pnand %p154_p9, %p151_p8 }
  0x46   :  { %159 = shalt.err (!%p156_p10)
}
  0x47   :  { %s185_s18 = smov 128   ;;  %s186_s19 = smov 8  }
  0x48   :  { %58 = dma.vmem_to_hbm [thread:$0]  %s53_s10, 256, %s247_s2, [#allocation7], %s185_s18, %s185_s18, %s186_s19  }
  0x49   :  { %172 = dma.done.wait [#allocation7], 256  }
  0x4a   :  { %173 = vsyncadd [#allocation7], 4294967040 }
  0x4b   :  { %62 = vsyncpa [#allocation7], 1 }
  0x4c   :  { %63 = vsyncmov [#allocation3] }
  0x4f   :  { %s64_s22 = vpop.sfrf %63 }
  0x50   :  { %p83_p11 = scmp.ne.s32.totalorder %s64_s22, 0 }
  0x52   :  { %68 = shalt.err (%p83_p11)  }

</bundles_post_ra>
